<compile_context>
chip_gen: v7x
topology: tpu7x:2x2x1
jax: 0.10.0
libtpu: 0.0.40
codegen_flags: <defaults>
</compile_context>

<pallas_src>
import math

import jax
import jax.numpy as jnp
from jax.experimental import pallas as pl
from jax.experimental.pallas import tpu as pltpu

LANES = 128        # pad every feature dim to the lane width
BATCH_TILE = 128   # rows per grid step (fills the MXU's M dimension)


def _make_fused_dnn_kernel(num_layers):
    """Kernel computing the whole Linear+ReLU tower for one batch tile."""
    def kernel(x_ref, w_ref, b_ref, o_ref):
        # x_ref: (TB, P) bf16   w_ref: (L, P, P) bf16   b_ref: (L, 1, P) f32
        # o_ref: (TB, P) f32
        a = x_ref[...]                                        # bf16 MXU operand
        for l in range(num_layers):                           # static unroll
            acc = jnp.dot(a, w_ref[l], preferred_element_type=jnp.float32)
            y = jnp.maximum(acc + b_ref[l], 0.0)              # f32 bias+ReLU (VPU)
            if l == num_layers - 1:
                o_ref[...] = y                                # lane-dense f32 store
            else:
                a = y.astype(jnp.bfloat16)                    # stays on-chip
    return kernel


def init_dnn_params(key, hidden_units):
    """Mirror the PyTorch module init:
       weight ~ Normal(0, 0.005); bias ~ U(-1/sqrt(fan_in), 1/sqrt(fan_in))."""
    params = []
    for fan_in, fan_out in zip(hidden_units[:-1], hidden_units[1:]):
        key, kw, kb = jax.random.split(key, 3)
        w = 0.005 * jax.random.normal(kw, (fan_out, fan_in), dtype=jnp.float32)
        bound = 1.0 / math.sqrt(fan_in)
        b = jax.random.uniform(kb, (fan_out,), dtype=jnp.float32,
                               minval=-bound, maxval=bound)
        params.append((w.T, b))   # pre-transposed: (fan_in, fan_out)
    return params


def pack_dnn_params(params, lanes=LANES):
    """Pack per-layer weights/biases into padded lane-aligned slabs (done once,
    outside the forward hot path)."""
    num_layers = len(params)
    w_packed = jnp.zeros((num_layers, lanes, lanes), dtype=jnp.bfloat16)
    b_packed = jnp.zeros((num_layers, 1, lanes), dtype=jnp.float32)
    for l, (w_t, b) in enumerate(params):
        k, n = w_t.shape
        assert k <= lanes and n <= lanes
        w_packed = w_packed.at[l, :k, :n].set(w_t.astype(jnp.bfloat16))
        b_packed = b_packed.at[l, 0, :n].set(b)
    return w_packed, b_packed


def dnn_forward(x, w_packed, b_packed, out_features, dropout_p=0.0):
    """Fused forward pass of the DNN tower. Dropout(p=0.0) is the identity."""
    # TODO(synk): train-time dropout (p > 0) would use pltpu.prng_random_bits.
    B, K = x.shape
    L, P, _ = w_packed.shape
    TB = BATCH_TILE
    B_pad = ((B + TB - 1) // TB) * TB

    # Zero-pad batch to a multiple of the tile and features to the lane width;
    # cast the activation input to bf16 (MXU operand dtype).
    x_pad = jnp.zeros((B_pad, P), dtype=jnp.bfloat16)
    x_pad = x_pad.at[:B, :K].set(x.astype(jnp.bfloat16))

    kernel = _make_fused_dnn_kernel(L)
    flops = 2 * B_pad * P * P * L
    bytes_accessed = (x_pad.size * 2 + w_packed.size * 2
                      + b_packed.size * 4 + B_pad * P * 4)

    out_pad = pl.pallas_call(
        kernel,
        out_shape=jax.ShapeDtypeStruct((B_pad, P), jnp.float32),
        grid=(B_pad // TB,),
        in_specs=[
            pl.BlockSpec((TB, P), lambda i: (i, 0)),        # batch-tiled input
            pl.BlockSpec((L, P, P), lambda i: (0, 0, 0)),   # VMEM-resident weights
            pl.BlockSpec((L, 1, P), lambda i: (0, 0, 0)),   # VMEM-resident biases
        ],
        out_specs=pl.BlockSpec((TB, P), lambda i: (i, 0)),  # lane-dense output slab
        compiler_params=pltpu.CompilerParams(
            dimension_semantics=("parallel",)),
        cost_estimate=pl.CostEstimate(flops=flops, transcendentals=0,
                                      bytes_accessed=bytes_accessed),
    )(x_pad, w_packed, b_packed)

    # Strip batch/feature padding; Dropout(p=0.0) is the identity.
    return out_pad[:B, :out_features]


if __name__ == "__main__":
    key = jax.random.PRNGKey(0)
    hidden_units = [32, 64, 32, 16]
    batch = 8

    kx, kp = jax.random.split(key)
    x = jax.random.normal(kx, (batch, hidden_units[0]), dtype=jnp.float32)
    params = init_dnn_params(kp, hidden_units)
    w_packed, b_packed = pack_dnn_params(params)

    out = dnn_forward(x, w_packed, b_packed, out_features=hidden_units[-1])
    out = jax.block_until_ready(out)
    assert out.shape == (batch, hidden_units[-1])

    # Reference 1: emulate the kernel's numerics (bf16 MXU operands, f32 acc).
    a = x.astype(jnp.bfloat16)
    for idx, (w_t, b) in enumerate(params):
        acc = jnp.dot(a, w_t.astype(jnp.bfloat16),
                      preferred_element_type=jnp.float32)
        y = jnp.maximum(acc + b, 0.0)
        a = y.astype(jnp.bfloat16) if idx < len(params) - 1 else y
    assert jnp.allclose(out, a, atol=1e-5, rtol=1e-3)

    # Reference 2: full-f32 math (the PyTorch module's semantics); bf16 matmul
    # operands only introduce sub-percent error at these magnitudes.
    ref = x
    for w_t, b in params:
        ref = jnp.maximum(ref @ w_t + b, 0.0)
    assert jnp.allclose(out, ref, atol=2e-2, rtol=5e-2)

    print("KERNEL_OK")
</pallas_src>

<mosaic_0001>
module attributes {stable_mosaic.version = 11 : i64} {
  func.func @kernel(%arg0: i32, %arg1: memref<128x128xbf16, #tpu.memory_space<vmem>>, %arg2: memref<3x128x128xbf16, #tpu.memory_space<vmem>>, %arg3: memref<3x1x128xf32, #tpu.memory_space<vmem>>, %arg4: memref<128x128xf32, #tpu.memory_space<vmem>>) attributes {dimension_semantics = [#tpu.dimension_semantics<parallel>], iteration_bounds = array<i64: 1>, scalar_prefetch = 0 : i64, scratch_operands = 0 : i64, tpu.core_type = #tpu.core_type<tc>, window_params = [{transform_indices = @transform_0, window_bounds = array<i64: 128, 128>}, {pipeline_mode = #tpu.pipeline_mode<synchronous>, transform_indices = @transform_1, window_bounds = array<i64: 3, 128, 128>}, {pipeline_mode = #tpu.pipeline_mode<synchronous>, transform_indices = @transform_2, window_bounds = array<i64: 3, 1, 128>}, {transform_indices = @transform_3, window_bounds = array<i64: 128, 128>}]} {
    %c0 = arith.constant 0 : index
    %c0_0 = arith.constant 0 : index
    %0 = vector.load %arg1[%c0, %c0_0] : memref<128x128xbf16, #tpu.memory_space<vmem>>, vector<128x128xbf16>
    %c0_1 = arith.constant 0 : index
    %c0_2 = arith.constant 0 : index
    %c0_3 = arith.constant 0 : index
    %1 = vector.load %arg2[%c0_1, %c0_2, %c0_3] : memref<3x128x128xbf16, #tpu.memory_space<vmem>>, vector<1x128x128xbf16>
    %2 = vector.shape_cast %1 : vector<1x128x128xbf16> to vector<128x128xbf16>
    %cst = arith.constant dense<0.000000e+00> : vector<128x128xf32>
    %3 = tpu.matmul %0, %2, %cst {dimension_numbers = #tpu.dot_dimension_numbers<[1], [0], [0], [1], [0, 0, 1, 1], [], []>} : vector<128x128xbf16>, vector<128x128xbf16>, vector<128x128xf32> -> vector<128x128xf32>
    %c0_4 = arith.constant 0 : index
    %c0_5 = arith.constant 0 : index
    %c0_6 = arith.constant 0 : index
    %4 = vector.load %arg3[%c0_4, %c0_5, %c0_6] : memref<3x1x128xf32, #tpu.memory_space<vmem>>, vector<1x1x128xf32>
    %5 = vector.shape_cast %4 : vector<1x1x128xf32> to vector<1x128xf32>
    %6 = vector.broadcast %5 : vector<1x128xf32> to vector<128x128xf32>
    %7 = arith.addf %3, %6 : vector<128x128xf32>
    %cst_7 = arith.constant 0.000000e+00 : f32
    %8 = vector.broadcast %cst_7 : f32 to vector<128x128xf32>
    %9 = arith.maximumf %7, %8 : vector<128x128xf32>
    %10 = arith.truncf %9 : vector<128x128xf32> to vector<128x128xbf16>
    %c1 = arith.constant 1 : index
    %c0_8 = arith.constant 0 : index
    %c0_9 = arith.constant 0 : index
    %11 = vector.load %arg2[%c1, %c0_8, %c0_9] : memref<3x128x128xbf16, #tpu.memory_space<vmem>>, vector<1x128x128xbf16>
    %12 = vector.shape_cast %11 : vector<1x128x128xbf16> to vector<128x128xbf16>
    %cst_10 = arith.constant dense<0.000000e+00> : vector<128x128xf32>
    %13 = tpu.matmul %10, %12, %cst_10 {dimension_numbers = #tpu.dot_dimension_numbers<[1], [0], [0], [1], [0, 0, 1, 1], [], []>} : vector<128x128xbf16>, vector<128x128xbf16>, vector<128x128xf32> -> vector<128x128xf32>
    %c1_11 = arith.constant 1 : index
    %c0_12 = arith.constant 0 : index
    %c0_13 = arith.constant 0 : index
    %14 = vector.load %arg3[%c1_11, %c0_12, %c0_13] : memref<3x1x128xf32, #tpu.memory_space<vmem>>, vector<1x1x128xf32>
    %15 = vector.shape_cast %14 : vector<1x1x128xf32> to vector<1x128xf32>
    %16 = vector.broadcast %15 : vector<1x128xf32> to vector<128x128xf32>
    %17 = arith.addf %13, %16 : vector<128x128xf32>
    %cst_14 = arith.constant 0.000000e+00 : f32
    %18 = vector.broadcast %cst_14 : f32 to vector<128x128xf32>
    %19 = arith.maximumf %17, %18 : vector<128x128xf32>
    %20 = arith.truncf %19 : vector<128x128xf32> to vector<128x128xbf16>
    %c2 = arith.constant 2 : index
    %c0_15 = arith.constant 0 : index
    %c0_16 = arith.constant 0 : index
    %21 = vector.load %arg2[%c2, %c0_15, %c0_16] : memref<3x128x128xbf16, #tpu.memory_space<vmem>>, vector<1x128x128xbf16>
    %22 = vector.shape_cast %21 : vector<1x128x128xbf16> to vector<128x128xbf16>
    %cst_17 = arith.constant dense<0.000000e+00> : vector<128x128xf32>
    %23 = tpu.matmul %20, %22, %cst_17 {dimension_numbers = #tpu.dot_dimension_numbers<[1], [0], [0], [1], [0, 0, 1, 1], [], []>} : vector<128x128xbf16>, vector<128x128xbf16>, vector<128x128xf32> -> vector<128x128xf32>
    %c2_18 = arith.constant 2 : index
    %c0_19 = arith.constant 0 : index
    %c0_20 = arith.constant 0 : index
    %24 = vector.load %arg3[%c2_18, %c0_19, %c0_20] : memref<3x1x128xf32, #tpu.memory_space<vmem>>, vector<1x1x128xf32>
    %25 = vector.shape_cast %24 : vector<1x1x128xf32> to vector<1x128xf32>
    %26 = vector.broadcast %25 : vector<1x128xf32> to vector<128x128xf32>
    %27 = arith.addf %23, %26 : vector<128x128xf32>
    %cst_21 = arith.constant 0.000000e+00 : f32
    %28 = vector.broadcast %cst_21 : f32 to vector<128x128xf32>
    %29 = arith.maximumf %27, %28 : vector<128x128xf32>
    %c0_22 = arith.constant 0 : index
    %c0_23 = arith.constant 0 : index
    %30 = vector.load %arg4[%c0_22, %c0_23] : memref<128x128xf32, #tpu.memory_space<vmem>>, vector<128x128xf32>
    tpu.vector_store %arg4[%c0_22, %c0_23], %29 {strides = array<i32>} : memref<128x128xf32, #tpu.memory_space<vmem>>, vector<128x128xf32>,
    return
  }
  func.func @transform_0(%arg0: i32) -> (i32, i32) {
    %c0_i32 = arith.constant 0 : i32
    %c0_i32_0 = arith.constant 0 : i32
    return %arg0, %c0_i32 : i32, i32
  }
  func.func @transform_1(%arg0: i32) -> (i32, i32, i32) {
    %c0_i32 = arith.constant 0 : i32
    %c0_i32_0 = arith.constant 0 : i32
    %c0_i32_1 = arith.constant 0 : i32
    %c0_i32_2 = arith.constant 0 : i32
    return %c0_i32, %c0_i32_0, %c0_i32_1 : i32, i32, i32
  }
  func.func @transform_2(%arg0: i32) -> (i32, i32, i32) {
    %c0_i32 = arith.constant 0 : i32
    %c0_i32_0 = arith.constant 0 : i32
    %c0_i32_1 = arith.constant 0 : i32
    %c0_i32_2 = arith.constant 0 : i32
    return %c0_i32, %c0_i32_0, %c0_i32_1 : i32, i32, i32
  }
  func.func @transform_3(%arg0: i32) -> (i32, i32) {
    %c0_i32 = arith.constant 0 : i32
    %c0_i32_0 = arith.constant 0 : i32
    return %arg0, %c0_i32 : i32, i32
  }
}

</mosaic_0001>

<bundles_post_ra>
// kernel: tpu_custom_call.1
= control target key start
LH: loop header
LB: loop body
LE: loop exit
PB: predicated region body
PF: predicated region fallthrough
CT: control target
= control target key end

     0   :  { %8 = vsyncpa [#allocation3], 0  ;;  %s1130_s0 = inlined_call_operand.hbm [shape: bf16[128,128], index: 0, kind: input, shape index: {}]   ;;  %s1131_s1 = inlined_call_operand.hbm [shape: bf16[3,128,128], index: 1, kind: input, shape index: {}]   ;;  %s1132_s2 = inlined_call_operand.vmem [shape: f32[3,1,128], index: 2, kind: input, shape index: {}]   ;;  %s1133_s3 = inlined_call_operand.hbm [shape: f32[128,128], index: 3, kind: output, shape index: {}]  }
   0x1   :  { %9 = vsyncpa [#allocation6], 0 }
   0x2   :  { %10 = vsyncpa [#allocation4], 0  ;;  %s1022_s12 = smov [#allocation2]   ;;  %s950_s16 = scalar_lea.hbm %s1130_s0, 1024 }
   0x3   :  { %s16_s13 = sshll.u32 %s1022_s12, 4  ;;  %p951_p0 = scmp.ne.s32.totalorder %s1130_s0, %s950_s16  ;;  %s17_s13 = int_to_ptr.vmem [resolvable:$true] %s16_s13 }
   0x4   :  { %p954_p1 = scmp.lt.u32.totalorder %s950_s16, %s1130_s0 }
   0x6   :  { %p956_p2 = pnand %p954_p1, %p951_p0 }
   0x8   :  { %959 = shalt.err (!%p956_p2)
}
   0x9   :  { %s960_s21 = scalar_lea.vmem %s17_s13, 1024  ;;  %p965_p4 = scmp.lt.s32.totalorder %s17_s13, %s17_s13 }
   0xa   :  { %p961_p3 = scmp.ne.s32.totalorder %s17_s13, %s960_s21  ;;  %p966_p5 = scmp.lt.s32.totalorder %s960_s21, %s960_s21 }
   0xc   :  { %p967_p6 = por %p966_p5, %p965_p4 }
   0xe   :  { %p968_p7 = pnand %p967_p6, %p961_p3 }
  0x10   :  { %971 = shalt.err (!%p968_p7)
}
  0x11   :  { %s1023_s22 = smov 64   ;;  %s1024_s23 = smov 4  }
  0x12   :  { %22 = dma.hbm_to_vmem [thread:$0]  %s1130_s0, 1024, %s17_s13, [#allocation3], %s1023_s22, %s1023_s22, %s1024_s23  }
  0x13   :  { %s1025_s26 = smov [#allocation5]   ;;  %s972_s30 = scalar_lea.hbm %s1131_s1, 3072 }
  0x14   :  { %s28_s27 = sshll.u32 %s1025_s26, 4  ;;  %p973_p8 = scmp.ne.s32.totalorder %s1131_s1, %s972_s30  ;;  %s29_s27 = int_to_ptr.vmem [resolvable:$true] %s28_s27 }
  0x15   :  { %p976_p9 = scmp.lt.u32.totalorder %s972_s30, %s1131_s1 }
  0x17   :  { %p978_p10 = pnand %p976_p9, %p973_p8 }
  0x19   :  { %981 = shalt.err (!%p978_p10)
}
  0x1a   :  { %s982_s8 = scalar_lea.vmem %s29_s27, 3072  ;;  %p987_p12 = scmp.lt.s32.totalorder %s29_s27, %s29_s27 }
  0x1b   :  { %p983_p11 = scmp.ne.s32.totalorder %s29_s27, %s982_s8  ;;  %p988_p13 = scmp.lt.s32.totalorder %s982_s8, %s982_s8 }
  0x1d   :  { %p989_p0 = por %p988_p13, %p987_p12 }
  0x1f   :  { %p990_p1 = pnand %p989_p0, %p983_p11 }
  0x21   :  { %993 = shalt.err (!%p990_p1)
}
  0x22   :  { %34 = dma.hbm_to_vmem [thread:$0]  %s1131_s1, 3072, %s29_s27, [#allocation6], %s1023_s22, %s1023_s22, %s1024_s23  }
  0x23   :  { %1016 = dma.done.wait [#allocation3], 1024  }
  0x24   :  { %1017 = vsyncadd [#allocation3], 4294966272 }
  0x25   :  { %1018 = dma.done.wait [#allocation6], 3072  }
  0x26   :  { %1019 = vsyncadd [#allocation6], 4294964224  ;;  %v918_v0 = vld [vmem:[#allocation5] sm:$0xff]   ;;  %v919_v1 = vld [vmem:[#allocation5 + $0x8] sm:$0xff]  }
  0x27   :  { %799 = vmatprep.subr.bf16.mxu0 %v918_v0  ;;  %v920_v2 = vld [vmem:[#allocation5 + $0x10] sm:$0xff]   ;;  %v921_v3 = vld [vmem:[#allocation5 + $0x18] sm:$0xff]   ;;  %v926_v4 = vld [vmem:[#allocation2] sm:$0xff]  }
  0x28   :  { %800 = vmatpush3.bf16.msra.mxu0 %v918_v0  ;;  %815 = vmatprep.mubr.bf16.mxu0 %v926_v4  ;;  %v922_v5 = vld [vmem:[#allocation5 + $0x20] sm:$0xff]   ;;  %v923_v6 = vld [vmem:[#allocation5 + $0x28] sm:$0xff]   ;;  %v924_v9 = vld [vmem:[#allocation5 + $0x30] sm:$0xff]  }
  0x29   :  { %801 = vmatprep.subr.bf16.mxu0 %v919_v1  ;;  %v934_v7 = vld [vmem:[#allocation5 + $0x40] sm:$0xff]   ;;  %v935_v8 = vld [vmem:[#allocation5 + $0x48] sm:$0xff]   ;;  %v936_v10 = vld [vmem:[#allocation5 + $0x50] sm:$0xff]  }
  0x2a   :  { %831 = vmatprep.subr.bf16.mxu1 %v934_v7  ;;  %v925_v11 = vld [vmem:[#allocation5 + $0x38] sm:$0xff]   ;;  %v938_v13 = vld [vmem:[#allocation5 + $0x60] sm:$0xff]   ;;  %v927_v14 = vld [vmem:[#allocation2 + $0x8] sm:$0xff]  }
  0x2b   :  { %832 = vmatpush3.bf16.msra.mxu1 %v934_v7  ;;  %v937_v12 = vld [vmem:[#allocation5 + $0x58] sm:$0xff]   ;;  %v928_v15 = vld [vmem:[#allocation2 + $0x10] sm:$0xff]   ;;  %v939_v16 = vld [vmem:[#allocation5 + $0x68] sm:$0xff]  }
  0x2c   :  { %802 = vmatpush3.bf16.msra.mxu0 %v919_v1  ;;  %833 = vmatprep.subr.bf16.mxu1 %v935_v8  ;;  %v929_v17 = vld [vmem:[#allocation2 + $0x18] sm:$0xff]   ;;  %v930_v18 = vld [vmem:[#allocation2 + $0x20] sm:$0xff]   ;;  %v931_v19 = vld [vmem:[#allocation2 + $0x28] sm:$0xff]  }
  0x2d   :  { %803 = vmatprep.subr.bf16.mxu0 %v920_v2  ;;  %v932_v20 = vld [vmem:[#allocation2 + $0x30] sm:$0xff]   ;;  %v933_v21 = vld [vmem:[#allocation2 + $0x38] sm:$0xff]   ;;  %v942_v24 = vld [vmem:[#allocation5 + $0x80] sm:$0xff]  }
  0x2e   :  { %v940_v22 = vld [vmem:[#allocation5 + $0x70] sm:$0xff]   ;;  %v941_v23 = vld [vmem:[#allocation5 + $0x78] sm:$0xff]   ;;  %v943_v25 = vld [vmem:[#allocation5 + $0x88] sm:$0xff]  }
  0x2f   :  { %834 = vmatpush3.bf16.msra.mxu1 %v935_v8  ;;  %v944_v26 = vld [vmem:[#allocation5 + $0x90] sm:$0xff]   ;;  %v1073_v27 = vld [vmem:[#allocation5 + $0x98] sm:$0xff]   ;;  %v1076_v28 = vld [vmem:[#allocation5 + $0xa0] sm:$0xff]  }
  0x30   :  { %804 = vmatpush3.bf16.msra.mxu0 %v920_v2  ;;  %835 = vmatprep.subr.bf16.mxu1 %v936_v10  ;;  %v1080_v29 = vld [vmem:[#allocation5 + $0xa8] sm:$0xff]   ;;  %v1088_v30 = vld [vmem:[%s1132_s2] ss:$0 sm:$0xff] }
  0x31   :  { %805 = vmatprep.subr.bf16.mxu0 %v921_v3 }
  0x33   :  { %836 = vmatpush3.bf16.msra.mxu1 %v936_v10 }
  0x34   :  { %806 = vmatpush3.bf16.msra.mxu0 %v921_v3  ;;  %837 = vmatprep.subr.bf16.mxu1 %v937_v12 }
  0x35   :  { %807 = vmatprep.subr.bf16.mxu0 %v922_v5 }
  0x37   :  { %838 = vmatpush3.bf16.msra.mxu1 %v937_v12 }
  0x38   :  { %808 = vmatpush3.bf16.msra.mxu0 %v922_v5  ;;  %839 = vmatprep.subr.bf16.mxu1 %v938_v13 }
  0x39   :  { %809 = vmatprep.subr.bf16.mxu0 %v923_v6 }
  0x3b   :  { %840 = vmatpush3.bf16.msra.mxu1 %v938_v13 }
  0x3c   :  { %810 = vmatpush3.bf16.msra.mxu0 %v923_v6  ;;  %841 = vmatprep.subr.bf16.mxu1 %v939_v16 }
  0x3d   :  { %811 = vmatprep.subr.bf16.mxu0 %v924_v9 }
  0x3f   :  { %842 = vmatpush3.bf16.msra.mxu1 %v939_v16 }
  0x40   :  { %812 = vmatpush3.bf16.msra.mxu0 %v924_v9  ;;  %843 = vmatprep.subr.bf16.mxu1 %v940_v22 }
  0x41   :  { %813 = vmatprep.subr.bf16.mxu0 %v925_v11 }
  0x43   :  { %844 = vmatpush3.bf16.msra.mxu1 %v940_v22 }
  0x44   :  { %814 = vmatpush3.bf16.msra.mxu0 %v925_v11  ;;  %845 = vmatprep.subr.bf16.mxu1 %v941_v23 }
  0x45   :  { %863 = vmatprep.subr.bf16.mxu0 %v942_v24 }
  0x47   :  { %816 = vmatmul.mubr.bf16.vlgmr.msra.gmra.mrb[0].mxu0 %v927_v14  ;;  %846 = vmatpush3.bf16.msra.mxu1 %v941_v23  ;;  %v948_v23 = vld [vmem:[#allocation5 + $0xb0] sm:$0xff]  }
  0x48   :  { %819 = vmatprep.mubr.bf16.mxu0 %v928_v15  ;;  %895 = vmatprep.subr.bf16.mxu1 %v942_v24 }
  0x49   :  { %864 = vmatpush3.bf16.msra.mxu0 %v942_v24 }
  0x4a   :  { %865 = vmatprep.subr.bf16.mxu0 %v943_v25 }
  0x4d   :  { %866 = vmatpush3.bf16.msra.mxu0 %v943_v25 }
  0x4e   :  { %867 = vmatprep.subr.bf16.mxu0 %v944_v26 }
  0x4f   :  { %820 = vmatmul.mubr.bf16.gmra.mrb[4].mxu0 %v929_v17 }
  0x50   :  { %823 = vmatprep.mubr.bf16.mxu0 %v930_v18 }
  0x51   :  { %868 = vmatpush3.bf16.msra.mxu0 %v944_v26 }
  0x52   :  { %869 = vmatprep.subr.bf16.mxu0 %v1073_v27 }
  0x55   :  { %870 = vmatpush3.bf16.msra.mxu0 %v1073_v27 }
  0x56   :  { %871 = vmatprep.subr.bf16.mxu0 %v1076_v28 }
  0x57   :  { %824 = vmatmul.mubr.bf16.gmra.mrb[8].mxu0 %v931_v19 }
  0x58   :  { %827 = vmatprep.mubr.bf16.mxu0 %v932_v20 }
  0x59   :  { %872 = vmatpush3.bf16.msra.mxu0 %v1076_v28 }
  0x5a   :  { %873 = vmatprep.subr.bf16.mxu0 %v1080_v29 }
  0x5d   :  { %874 = vmatpush3.bf16.msra.mxu0 %v1080_v29 }
  0x5e   :  { %875 = vmatprep.subr.bf16.mxu0 %v948_v23 }
  0x5f   :  { %828 = vmatmul.mubr.bf16.gmra.mrb[12].mxu0 %v933_v21 }
  0x61   :  { %876 = vmatpush3.bf16.msra.mxu0 %v948_v23 }
 0x11a   :  { %v817_v31 = vpop.f32.mrb[0].mxu0 }
 0x11b   :  { %v222_v32 = vadd.f32 %v817_v31, %v1088_v30  ;;  %v213_v33 = vpop.f32.mrb[1].mxu0 }
 0x11c   :  { %v214_v34 = vadd.f32 %v1088_v30, %v213_v33  ;;  %v818_v35 = vpop.f32.mrb[2].mxu0 }
 0x11d   :  { %v225_v36 = vadd.f32 %v818_v35, %v1088_v30  ;;  %v216_v37 = vpop.f32.mrb[3].mxu0  ;;  %v278_v39 = vmax.f32 %v222_v32, 0.0 }
 0x11e   :  { %v217_v38 = vadd.f32 %v1088_v30, %v216_v37  ;;  %v276_v41 = vmax.f32 %v214_v34, 0.0 }
 0x11f   :  { %v279_v40 = vmax.f32 %v225_v36, 0.0 }
 0x120   :  { %v277_v42 = vmax.f32 %v217_v38, 0.0 }
 0x121   :  { %v293_v43 = vpack.c.bf16 %v279_v40, %v278_v39 }
 0x122   :  { %v821_v44 = vpop.f32.mrb[4].mxu0  ;;  %v292_v45 = vpack.c.bf16 %v277_v42, %v276_v41 }
 0x123   :  { %v238_v46 = vadd.f32 %v821_v44, %v1088_v30  ;;  %v229_v47 = vpop.f32.mrb[5].mxu0 }
 0x124   :  { %v230_v48 = vadd.f32 %v1088_v30, %v229_v47  ;;  %v822_v49 = vpop.f32.mrb[6].mxu0  ;;  %847 = vmatprep.mubr.bf16.mxu1 %v292_v45 }
 0x125   :  { %v241_v50 = vadd.f32 %v822_v49, %v1088_v30  ;;  %v232_v51 = vpop.f32.mrb[7].mxu0  ;;  %848 = vmatmul.mubr.bf16.vlgmr.msra.gmra.mrb[0].mxu1 %v293_v43  ;;  %v282_v53 = vmax.f32 %v238_v46, 0.0 }
 0x126   :  { %v233_v52 = vadd.f32 %v1088_v30, %v232_v51  ;;  %903 = vmatpush3.bf16.msra.mxu1 %v942_v24  ;;  %v280_v55 = vmax.f32 %v230_v48, 0.0  ;;  %v949_v24 = vld [vmem:[#allocation5 + $0xb8] sm:$0xff]  }
 0x127   :  { %v283_v54 = vmax.f32 %v241_v50, 0.0  ;;  %896 = vmatprep.subr.bf16.mxu1 %v943_v25  ;;  %877 = vmatprep.subr.bf16.mxu0 %v949_v24 }
 0x128   :  { %v281_v56 = vmax.f32 %v233_v52, 0.0  ;;  %878 = vmatpush3.bf16.msra.mxu0 %v949_v24 }
 0x129   :  { %v295_v57 = vpack.c.bf16 %v283_v54, %v282_v53 }
 0x12a   :  { %v294_v58 = vpack.c.bf16 %v281_v56, %v280_v55  ;;  %v825_v59 = vpop.f32.mrb[8].mxu0  ;;  %904 = vmatpush3.bf16.msra.mxu1 %v943_v25  ;;  %v732_v25 = vld [vmem:[%s1132_s2 + $0x1] ss:$0 sm:$0xff] }
 0x12b   :  { %v254_v60 = vadd.f32 %v825_v59, %v1088_v30  ;;  %v245_v61 = vpop.f32.mrb[9].mxu0  ;;  %897 = vmatprep.subr.bf16.mxu1 %v944_v26 }
 0x12c   :  { %v246_v62 = vadd.f32 %v1088_v30, %v245_v61  ;;  %v826_v63 = vpop.f32.mrb[10].mxu0  ;;  %851 = vmatprep.mubr.bf16.mxu1 %v294_v58 }
 0x12d   :  { %v257_v0 = vadd.f32 %v826_v63, %v1088_v30  ;;  %v248_v1 = vpop.f32.mrb[11].mxu0  ;;  %852 = vmatmul.mubr.bf16.gmra.mrb[4].mxu1 %v295_v57  ;;  %v286_v3 = vmax.f32 %v254_v60, 0.0 }
 0x12e   :  { %v249_v2 = vadd.f32 %v1088_v30, %v248_v1  ;;  %905 = vmatpush3.bf16.msra.mxu1 %v944_v26  ;;  %v284_v5 = vmax.f32 %v246_v62, 0.0 }
 0x12f   :  { %v287_v4 = vmax.f32 %v257_v0, 0.0  ;;  %898 = vmatprep.subr.bf16.mxu1 %v1073_v27 }
 0x130   :  { %v285_v6 = vmax.f32 %v249_v2, 0.0 }
 0x131   :  { %v297_v7 = vpack.c.bf16 %v287_v4, %v286_v3 }
 0x132   :  { %v296_v8 = vpack.c.bf16 %v285_v6, %v284_v5  ;;  %v829_v9 = vpop.f32.mrb[12].mxu0  ;;  %906 = vmatpush3.bf16.msra.mxu1 %v1073_v27 }
 0x133   :  { %v270_v10 = vadd.f32 %v829_v9, %v1088_v30  ;;  %v261_v11 = vpop.f32.mrb[13].mxu0  ;;  %899 = vmatprep.subr.bf16.mxu1 %v1076_v28 }
 0x134   :  { %v262_v12 = vadd.f32 %v1088_v30, %v261_v11  ;;  %v830_v13 = vpop.f32.mrb[14].mxu0  ;;  %855 = vmatprep.mubr.bf16.mxu1 %v296_v8 }
 0x135   :  { %v273_v14 = vadd.f32 %v830_v13, %v1088_v30  ;;  %v264_v15 = vpop.f32.mrb[15].mxu0  ;;  %856 = vmatmul.mubr.bf16.gmra.mrb[8].mxu1 %v297_v7  ;;  %v290_v17 = vmax.f32 %v270_v10, 0.0 }
 0x136   :  { %v265_v16 = vadd.f32 %v1088_v30, %v264_v15  ;;  %907 = vmatpush3.bf16.msra.mxu1 %v1076_v28  ;;  %v288_v19 = vmax.f32 %v262_v12, 0.0 }
 0x137   :  { %v291_v18 = vmax.f32 %v273_v14, 0.0  ;;  %900 = vmatprep.subr.bf16.mxu1 %v1080_v29 }
 0x138   :  { %v289_v20 = vmax.f32 %v265_v16, 0.0 }
 0x139   :  { %v299_v21 = vpack.c.bf16 %v291_v18, %v290_v17  ;;  %v742_v18 = vld [vmem:[%s1132_s2 + $0x2] ss:$0 sm:$0xff]  ;;  %s1026_s2 = smov [#allocation7]  }
 0x13a   :  { %v298_v22 = vpack.c.bf16 %v289_v20, %v288_v19  ;;  %908 = vmatpush3.bf16.msra.mxu1 %v1080_v29  ;;  %s701_s15 = sshll.u32 %s1026_s2, 4  ;;  %s702_s15 = int_to_ptr.vmem [resolvable:$true] %s701_s15 }
 0x13b   :  { %901 = vmatprep.subr.bf16.mxu1 %v948_v23  ;;  %s994_s16 = scalar_lea.vmem %s702_s15, 2048  ;;  %p999_p3 = scmp.lt.s32.totalorder %s702_s15, %s702_s15 }
 0x13c   :  { %859 = vmatprep.mubr.bf16.mxu1 %v298_v22  ;;  %p995_p2 = scmp.ne.s32.totalorder %s702_s15, %s994_s16  ;;  %p1000_p4 = scmp.lt.s32.totalorder %s994_s16, %s994_s16 }
 0x13d   :  { %860 = vmatmul.mubr.bf16.gmra.mrb[12].mxu1 %v299_v21 }
 0x13e   :  { %909 = vmatpush3.bf16.msra.mxu1 %v948_v23  ;;  %p1001_p5 = por %p1000_p4, %p999_p3 }
 0x13f   :  { %902 = vmatprep.subr.bf16.mxu1 %v949_v24 }
 0x140   :  { %p1002_p6 = pnand %p1001_p5, %p995_p2 }
 0x142   :  { %910 = vmatpush3.bf16.msra.mxu1 %v949_v24 }
 0x1f8   :  { %v849_v26 = vpop.f32.mrb[0].mxu1 }
 0x1f9   :  { %v416_v27 = vadd.f32 %v849_v26, %v732_v25  ;;  %v407_v28 = vpop.f32.mrb[1].mxu1 }
 0x1fa   :  { %v408_v29 = vadd.f32 %v732_v25, %v407_v28  ;;  %v850_v30 = vpop.f32.mrb[2].mxu1 }
 0x1fb   :  { %v419_v31 = vadd.f32 %v850_v30, %v732_v25  ;;  %v410_v32 = vpop.f32.mrb[3].mxu1  ;;  %v472_v34 = vmax.f32 %v416_v27, 0.0 }
 0x1fc   :  { %v411_v33 = vadd.f32 %v732_v25, %v410_v32  ;;  %v470_v36 = vmax.f32 %v408_v29, 0.0 }
 0x1fd   :  { %v473_v35 = vmax.f32 %v419_v31, 0.0 }
 0x1fe   :  { %v471_v37 = vmax.f32 %v411_v33, 0.0 }
 0x1ff   :  { %v487_v38 = vpack.c.bf16 %v473_v35, %v472_v34 }
 0x200   :  { %v486_v39 = vpack.c.bf16 %v471_v37, %v470_v36  ;;  %v853_v40 = vpop.f32.mrb[4].mxu1 }
 0x201   :  { %v432_v41 = vadd.f32 %v853_v40, %v732_v25  ;;  %v423_v42 = vpop.f32.mrb[5].mxu1 }
 0x202   :  { %v424_v43 = vadd.f32 %v732_v25, %v423_v42  ;;  %v854_v44 = vpop.f32.mrb[6].mxu1  ;;  %879 = vmatprep.mubr.bf16.mxu0 %v486_v39 }
 0x203   :  { %v435_v45 = vadd.f32 %v854_v44, %v732_v25  ;;  %v426_v46 = vpop.f32.mrb[7].mxu1  ;;  %880 = vmatmul.mubr.bf16.vlgmr.msra.gmra.mrb[16].mxu0 %v487_v38  ;;  %v476_v48 = vmax.f32 %v432_v41, 0.0 }
 0x204   :  { %v427_v47 = vadd.f32 %v732_v25, %v426_v46  ;;  %v474_v50 = vmax.f32 %v424_v43, 0.0 }
 0x205   :  { %v477_v49 = vmax.f32 %v435_v45, 0.0 }
 0x206   :  { %v475_v51 = vmax.f32 %v427_v47, 0.0 }
 0x207   :  { %v489_v52 = vpack.c.bf16 %v477_v49, %v476_v48 }
 0x208   :  { %v488_v53 = vpack.c.bf16 %v475_v51, %v474_v50  ;;  %v857_v54 = vpop.f32.mrb[8].mxu1 }
 0x209   :  { %v448_v55 = vadd.f32 %v857_v54, %v732_v25  ;;  %v439_v56 = vpop.f32.mrb[9].mxu1 }
 0x20a   :  { %v440_v57 = vadd.f32 %v732_v25, %v439_v56  ;;  %v858_v58 = vpop.f32.mrb[10].mxu1  ;;  %883 = vmatprep.mubr.bf16.mxu0 %v488_v53 }
 0x20b   :  { %v451_v59 = vadd.f32 %v858_v58, %v732_v25  ;;  %v442_v60 = vpop.f32.mrb[11].mxu1  ;;  %884 = vmatmul.mubr.bf16.gmra.mrb[20].mxu0 %v489_v52  ;;  %v480_v62 = vmax.f32 %v448_v55, 0.0 }
 0x20c   :  { %v443_v61 = vadd.f32 %v732_v25, %v442_v60  ;;  %v478_v0 = vmax.f32 %v440_v57, 0.0 }
 0x20d   :  { %v481_v63 = vmax.f32 %v451_v59, 0.0 }
 0x20e   :  { %v479_v1 = vmax.f32 %v443_v61, 0.0 }
 0x20f   :  { %v491_v2 = vpack.c.bf16 %v481_v63, %v480_v62 }
 0x210   :  { %v490_v3 = vpack.c.bf16 %v479_v1, %v478_v0  ;;  %v861_v4 = vpop.f32.mrb[12].mxu1 }
 0x211   :  { %v464_v5 = vadd.f32 %v861_v4, %v732_v25  ;;  %v455_v6 = vpop.f32.mrb[13].mxu1 }
 0x212   :  { %v456_v7 = vadd.f32 %v732_v25, %v455_v6  ;;  %v862_v8 = vpop.f32.mrb[14].mxu1  ;;  %887 = vmatprep.mubr.bf16.mxu1 %v490_v3 }
 0x213   :  { %v467_v9 = vadd.f32 %v862_v8, %v732_v25  ;;  %v458_v10 = vpop.f32.mrb[15].mxu1  ;;  %888 = vmatmul.mubr.bf16.vlgmr.msra.gmra.mrb[16].mxu1 %v491_v2  ;;  %v484_v12 = vmax.f32 %v464_v5, 0.0 }
 0x214   :  { %v459_v11 = vadd.f32 %v732_v25, %v458_v10  ;;  %v482_v14 = vmax.f32 %v456_v7, 0.0 }
 0x215   :  { %v485_v13 = vmax.f32 %v467_v9, 0.0 }
 0x216   :  { %v483_v15 = vmax.f32 %v459_v11, 0.0 }
 0x217   :  { %v493_v16 = vpack.c.bf16 %v485_v13, %v484_v12 }
 0x218   :  { %v492_v17 = vpack.c.bf16 %v483_v15, %v482_v14 }
 0x21a   :  { %891 = vmatprep.mubr.bf16.mxu1 %v492_v17 }
 0x21b   :  { %892 = vmatmul.mubr.bf16.gmra.mrb[20].mxu1 %v493_v16 }
 0x2d6   :  { %v881_v19 = vpop.f32.mrb[16].mxu0 }
 0x2d7   :  { %v610_v20 = vadd.f32 %v881_v19, %v742_v18  ;;  %v601_v21 = vpop.f32.mrb[17].mxu0 }
 0x2d8   :  { %v602_v22 = vadd.f32 %v742_v18, %v601_v21  ;;  %v882_v23 = vpop.f32.mrb[18].mxu0 }
 0x2d9   :  { %v666_v24 = vmax.f32 %v610_v20, 0.0  ;;  %v613_v26 = vadd.f32 %v882_v23, %v742_v18  ;;  %v604_v25 = vpop.f32.mrb[19].mxu0 }
 0x2da   :  { %v664_v27 = vmax.f32 %v602_v22, 0.0  ;;  %v605_v28 = vadd.f32 %v742_v18, %v604_v25 }
 0x2db   :  { %682 = vst [vmem:[#allocation7 + $0x10] sm:$0xff] %v666_v24  ;;  %v667_v29 = vmax.f32 %v613_v26, 0.0 }
 0x2dc   :  { %680 = vst [vmem:[#allocation7] sm:$0xff] %v664_v27  ;;  %v665_v30 = vmax.f32 %v605_v28, 0.0 }
 0x2dd   :  { %683 = vst [vmem:[#allocation7 + $0x18] sm:$0xff] %v667_v29 }
 0x2de   :  { %681 = vst [vmem:[#allocation7 + $0x8] sm:$0xff] %v665_v30  ;;  %v885_v31 = vpop.f32.mrb[20].mxu0 }
 0x2df   :  { %v626_v32 = vadd.f32 %v885_v31, %v742_v18  ;;  %v617_v33 = vpop.f32.mrb[21].mxu0 }
 0x2e0   :  { %v618_v34 = vadd.f32 %v742_v18, %v617_v33  ;;  %v886_v35 = vpop.f32.mrb[22].mxu0 }
 0x2e1   :  { %v670_v36 = vmax.f32 %v626_v32, 0.0  ;;  %v629_v37 = vadd.f32 %v886_v35, %v742_v18  ;;  %v620_v38 = vpop.f32.mrb[23].mxu0 }
 0x2e2   :  { %v668_v39 = vmax.f32 %v618_v34, 0.0  ;;  %v621_v40 = vadd.f32 %v742_v18, %v620_v38 }
 0x2e3   :  { %686 = vst [vmem:[#allocation7 + $0x30] sm:$0xff] %v670_v36  ;;  %v671_v41 = vmax.f32 %v629_v37, 0.0 }
 0x2e4   :  { %684 = vst [vmem:[#allocation7 + $0x20] sm:$0xff] %v668_v39  ;;  %v669_v42 = vmax.f32 %v621_v40, 0.0 }
 0x2e5   :  { %687 = vst [vmem:[#allocation7 + $0x38] sm:$0xff] %v671_v41 }
 0x2e6   :  { %685 = vst [vmem:[#allocation7 + $0x28] sm:$0xff] %v669_v42  ;;  %v889_v43 = vpop.f32.mrb[16].mxu1 }
 0x2e7   :  { %v642_v44 = vadd.f32 %v889_v43, %v742_v18  ;;  %v633_v45 = vpop.f32.mrb[17].mxu1 }
 0x2e8   :  { %v634_v46 = vadd.f32 %v742_v18, %v633_v45  ;;  %v890_v47 = vpop.f32.mrb[18].mxu1 }
 0x2e9   :  { %v674_v48 = vmax.f32 %v642_v44, 0.0  ;;  %v645_v49 = vadd.f32 %v890_v47, %v742_v18  ;;  %v636_v50 = vpop.f32.mrb[19].mxu1 }
 0x2ea   :  { %v672_v51 = vmax.f32 %v634_v46, 0.0  ;;  %v637_v52 = vadd.f32 %v742_v18, %v636_v50 }
 0x2eb   :  { %690 = vst [vmem:[#allocation7 + $0x50] sm:$0xff] %v674_v48  ;;  %v675_v53 = vmax.f32 %v645_v49, 0.0 }
 0x2ec   :  { %688 = vst [vmem:[#allocation7 + $0x40] sm:$0xff] %v672_v51  ;;  %v673_v54 = vmax.f32 %v637_v52, 0.0 }
 0x2ed   :  { %691 = vst [vmem:[#allocation7 + $0x58] sm:$0xff] %v675_v53 }
 0x2ee   :  { %689 = vst [vmem:[#allocation7 + $0x48] sm:$0xff] %v673_v54  ;;  %v893_v55 = vpop.f32.mrb[20].mxu1 }
 0x2ef   :  { %v658_v56 = vadd.f32 %v893_v55, %v742_v18  ;;  %v649_v57 = vpop.f32.mrb[21].mxu1 }
 0x2f0   :  { %v650_v58 = vadd.f32 %v742_v18, %v649_v57  ;;  %v894_v59 = vpop.f32.mrb[22].mxu1 }
 0x2f1   :  { %v678_v60 = vmax.f32 %v658_v56, 0.0  ;;  %v661_v61 = vadd.f32 %v894_v59, %v742_v18  ;;  %v652_v62 = vpop.f32.mrb[23].mxu1 }
 0x2f2   :  { %v676_v63 = vmax.f32 %v650_v58, 0.0  ;;  %v653_v0 = vadd.f32 %v742_v18, %v652_v62 }
 0x2f3   :  { %694 = vst [vmem:[#allocation7 + $0x70] sm:$0xff] %v678_v60  ;;  %v679_v1 = vmax.f32 %v661_v61, 0.0 }
 0x2f4   :  { %692 = vst [vmem:[#allocation7 + $0x60] sm:$0xff] %v676_v63  ;;  %v677_v2 = vmax.f32 %v653_v0, 0.0 }
 0x2f5   :  { %695 = vst [vmem:[#allocation7 + $0x78] sm:$0xff] %v679_v1 }
 0x2f6   :  { %693 = vst [vmem:[#allocation7 + $0x68] sm:$0xff] %v677_v2 }
 0x2f7   :  { %1005 = shalt.err (!%p1002_p6)
}
 0x2f8   :  { %s1006_s19 = scalar_lea.hbm %s1133_s3, 2048 }
 0x2f9   :  { %p1007_p7 = scmp.ne.s32.totalorder %s1133_s3, %s1006_s19  ;;  %p1010_p8 = scmp.lt.u32.totalorder %s1006_s19, %s1133_s3 }
 0x2fb   :  { %p1012_p9 = pnand %p1010_p8, %p1007_p7 }
 0x2fd   :  { %1015 = shalt.err (!%p1012_p9)
}
 0x2fe   :  { %s1027_s24 = smov 128   ;;  %s1028_s25 = smov 8  }
 0x2ff   :  { %707 = dma.vmem_to_hbm [thread:$0]  %s702_s15, 2048, %s1133_s3, [#allocation4], %s1027_s24, %s1027_s24, %s1028_s25  }
 0x300   :  { %1020 = dma.done.wait [#allocation4], 2048  }
 0x301   :  { %1021 = vsyncadd [#allocation4], 4294965248 }
 0x302   :  { %711 = vsyncpa [#allocation3], 1 }
 0x303   :  { %712 = vsyncpa [#allocation6], 1 }
 0x304   :  { %713 = vsyncpa [#allocation4], 1 }

</bundles_post_ra>
